<compile_context>
chip_gen: v5e
topology: v5e:2x2
jax: 0.10.0
libtpu: 0.0.40
codegen_flags: <defaults>
</compile_context>

<pallas_src>
import functools
import math

import jax
import jax.numpy as jnp
from jax import lax
from jax.experimental import pallas as pl
from jax.experimental.pallas import tpu as pltpu


def _pixelcnn_kernel(pv_ref, ph_ref, wv_ref, wh_ref, w1x1_ref, bias_ref, out_ref,
                     *, H, W, Cin, Cout, nb, residual):
    f32 = jnp.float32
    HW = H * W

    wv = wv_ref[...]              # (Cout, Tv*Cin) bf16, mask already folded in
    wh = wh_ref[...]              # (Cout, Th*Cin) bf16, mask already folded in
    wv2h = w1x1_ref[0]            # (Cout, Cout) f32
    wh2h = w1x1_ref[1]            # (Cout, Cout) f32
    bv, bh, bv2h, bh2h = (bias_ref[:, j:j + 1] for j in range(4))   # (Cout, 1)

    for b in range(nb):           # static unrolled loop over images in this block
        pv = pv_ref[b]            # (Tv*Cin, HW) bf16  im2col of the vertical stack
        ph = ph_ref[b]            # (Th*Cin, HW) bf16  im2col of the horizontal stack

        # masked convs == one fused lane-dense matmul each (taps*channels on K axis)
        acc_v = jnp.dot(wv, pv, preferred_element_type=f32) + bv    # (Cout, HW)
        acc_h = jnp.dot(wh, ph, preferred_element_type=f32) + bh    # (Cout, HW)

        # down_shift(vo): spatial rows move down by one == lane shift by W,
        # zeros in the first image row.  (Applied to pre-ReLU vo, incl. bias.)
        # TODO(synk): pltpu.roll(acc_v, W, axis=1) + iota mask would keep this on
        # the XLU slot; the explicit concat below is only a tiny (Cout, HW) copy.
        vo_ds = jnp.concatenate(
            [jnp.zeros((Cout, W), f32), acc_v[:, :HW - W]], axis=1)

        # ho = ho + vtohori(down_shift(vo))    (1x1 conv == channel matmul)
        ho = acc_h + jnp.dot(wv2h, vo_ds, preferred_element_type=f32) + bv2h
        vo = jnp.maximum(acc_v, 0.0)          # F.relu(vo)
        ho = jnp.maximum(ho, 0.0)             # F.relu(ho); relu(relu(x)) == relu(x)
        ho = jnp.dot(wh2h, ho, preferred_element_type=f32) + bh2h
        if residual:
            # first Th-block of the horizontal patch is the unshifted hi
            ho = ho + ph[:Cin].astype(f32)

        # single packed, lane-dense store: [vo ; ho] -> (2*Cout, HW)
        out_ref[b] = jnp.concatenate([vo, ho], axis=0).astype(out_ref.dtype)


def stacked_pixelcnn_layer(x, params, *, k, residual, mask_type="B",
                           images_per_block=None):
    """x: (N, 2*in_channels, H, W) NCHW, like the PyTorch forward."""
    N, C2, H, W = x.shape
    Cin = C2 // 2
    Cout = params["bv"].shape[0]
    p = k // 2
    HW = H * W
    if residual:
        assert Cin == Cout, "residual connection requires in_channels == out_channels"

    vi = x[:, :Cin]                                   # (N, Cin, H, W)
    hi = x[:, Cin:]                                   # (N, Cin, H, W)

    # Taps that survive the causal masks.  Vertical: rows 0..k//2, all columns.
    # Horizontal: cols 0..k//2 ('B'); for 'A' the centre col is zero and is only
    # kept when the residual needs the unshifted hi (centre tap goes first so the
    # kernel can read hi at sublane offset 0).
    include_center = residual or mask_type != "A"
    taps_v = [(dy, dx) for dy in range(p + 1) for dx in range(k)]
    taps_h = ([p] if include_center else []) + list(range(p))
    Tv, Th = len(taps_v), len(taps_h)

    cdt = jnp.bfloat16            # MXU compute dtype (f32 accumulation in-kernel)

    # --- im2col in the wrapper (review item 1): channels/taps on sublanes, H*W on
    # lanes.  One lane-dense patch tensor per stack, cast to bf16. --------------
    vi_pad = jnp.pad(vi, ((0, 0), (0, 0), (p, p), (p, p)))
    patch_v = jnp.stack([vi_pad[:, :, dy:dy + H, dx:dx + W] for dy, dx in taps_v],
                        axis=1).reshape(N, Tv * Cin, HW).astype(cdt)
    hi_pad = jnp.pad(hi, ((0, 0), (0, 0), (0, 0), (p, p)))
    patch_h = jnp.stack([hi_pad[:, :, :, dx:dx + W] for dx in taps_h],
                        axis=1).reshape(N, Th * Cin, HW).astype(cdt)

    # --- fold conv weights into (Cout, taps*Cin) matrices matching the tap order.
    # TODO(synk): the torch module mutates weight.data *= mask every forward
    # (stateful but idempotent) — here the mask is folded into the weights once.
    wv = params["wv_masked"]                          # (Cout, Cin, k, k) OIHW
    wh = params["wh_masked"]                          # (Cout, Cin, 1, k)
    wv_flat = jnp.stack([wv[:, :, dy, dx] for dy, dx in taps_v],
                        axis=1).reshape(Cout, Tv * Cin).astype(cdt)
    wh_flat = jnp.stack([wh[:, :, 0, dx] for dx in taps_h],
                        axis=1).reshape(Cout, Th * Cin).astype(cdt)
    w1x1 = jnp.stack([params["wv2h"][:, :, 0, 0],
                      params["wh2h"][:, :, 0, 0]], axis=0)          # (2, Cout, Cout)
    biases = jnp.stack([params["bv"], params["bh"],
                        params["bv2h"], params["bh2h"]], axis=1)    # (Cout, 4)

    # --- images per grid step: biggest block that fits a small VMEM budget -----
    itemsize = jnp.dtype(x.dtype).itemsize
    per_img = (Tv + Th) * Cin * HW * 2 + 2 * Cout * HW * itemsize
    if images_per_block is None:
        nb = max(1, min(N, (4 << 20) // max(per_img, 1)))
    else:
        nb = max(1, min(N, images_per_block))
    while N % nb:
        nb -= 1

    # --- explicit scoped-VMEM limit derived from the blocks (v7x feedback) -----
    weight_bytes = (Tv + Th) * Cin * Cout * 2 + 2 * Cout * Cout * 4 + Cout * 4 * 4
    vmem_limit = int(min(max(4 * nb * per_img + weight_bytes + (2 << 20), 8 << 20),
                         96 << 20))

    kernel = functools.partial(_pixelcnn_kernel, H=H, W=W, Cin=Cin, Cout=Cout,
                               nb=nb, residual=residual)

    out = pl.pallas_call(
        kernel,
        out_shape=jax.ShapeDtypeStruct((N, 2 * Cout, HW), x.dtype),
        grid_spec=pltpu.PrefetchScalarGridSpec(
            num_scalar_prefetch=0,
            grid=(N // nb,),
            in_specs=[
                pl.BlockSpec((nb, Tv * Cin, HW), lambda n: (n, 0, 0)),
                pl.BlockSpec((nb, Th * Cin, HW), lambda n: (n, 0, 0)),
                pl.BlockSpec((Cout, Tv * Cin), lambda n: (0, 0)),
                pl.BlockSpec((Cout, Th * Cin), lambda n: (0, 0)),
                pl.BlockSpec((2, Cout, Cout), lambda n: (0, 0, 0)),
                pl.BlockSpec((Cout, 4), lambda n: (0, 0)),
            ],
            out_specs=pl.BlockSpec((nb, 2 * Cout, HW), lambda n: (n, 0, 0)),
        ),
        compiler_params=pltpu.CompilerParams(
            dimension_semantics=("parallel",),
            vmem_limit_bytes=vmem_limit),
    )(patch_v, patch_h, wv_flat, wh_flat, w1x1, biases)

    # already NCHW with [vo ; ho] packed on the channel axis — reshape only.
    return out.reshape(N, 2 * Cout, H, W)


# ----------------------------- parameters ----------------------------------
def init_params(key, in_channels, out_channels, k, mask_type):
    """Deterministic Conv2d-style init (U(-1/sqrt(fan_in), 1/sqrt(fan_in)))."""
    keys = jax.random.split(key, 8)

    def conv_init(kw, kb, shape):
        fan_in = shape[1] * shape[2] * shape[3]
        bound = 1.0 / math.sqrt(fan_in)
        w = jax.random.uniform(kw, shape, jnp.float32, -bound, bound)
        b = jax.random.uniform(kb, (shape[0],), jnp.float32, -bound, bound)
        return w, b

    wv, bv = conv_init(keys[0], keys[1], (out_channels, in_channels, k, k))
    wh, bh = conv_init(keys[2], keys[3], (out_channels, in_channels, 1, k))
    wv2h, bv2h = conv_init(keys[4], keys[5], (out_channels, out_channels, 1, 1))
    wh2h, bh2h = conv_init(keys[6], keys[7], (out_channels, out_channels, 1, 1))

    vmask = jnp.ones((out_channels, in_channels, k, k), jnp.float32)
    vmask = vmask.at[:, :, k // 2 + 1:, :].set(0.0)
    hmask = jnp.ones((out_channels, in_channels, 1, k), jnp.float32)
    hmask = hmask.at[:, :, :, k // 2 + 1:].set(0.0)
    if mask_type == "A":
        hmask = hmask.at[:, :, :, k // 2].set(0.0)

    return dict(wv_masked=wv * vmask, bv=bv, wh_masked=wh * hmask, bh=bh,
                wv2h=wv2h, bv2h=bv2h, wh2h=wh2h, bh2h=bh2h)


# ----------------------------- pure-JAX reference ---------------------------
def _conv_nchw(x, w, padding):
    return lax.conv_general_dilated(
        x, w, window_strides=(1, 1), padding=padding,
        dimension_numbers=("NCHW", "OIHW", "NCHW"),
        precision=lax.Precision.HIGHEST)


def ref_forward(x, params, *, k, residual):
    Cin = x.shape[1] // 2
    p = k // 2
    vi, hi = x[:, :Cin], x[:, Cin:]
    bias = lambda b: b[None, :, None, None]
    vo = _conv_nchw(vi, params["wv_masked"], ((p, p), (p, p))) + bias(params["bv"])
    ho = _conv_nchw(hi, params["wh_masked"], ((0, 0), (p, p))) + bias(params["bh"])
    ds = jnp.pad(vo[:, :, :-1, :], ((0, 0), (0, 0), (1, 0), (0, 0)))
    ho = ho + _conv_nchw(ds, params["wv2h"], ((0, 0), (0, 0))) + bias(params["bv2h"])
    vo = jax.nn.relu(vo)
    ho = jax.nn.relu(ho)
    ho = _conv_nchw(jax.nn.relu(ho), params["wh2h"], ((0, 0), (0, 0))) + bias(params["bh2h"])
    if residual:
        ho = ho + hi
    return jnp.concatenate([vo, ho], axis=1)


if __name__ == "__main__":
    N, Cin, Cout, H, W, K = 2, 4, 4, 16, 16, 3
    mask_type, residual = "B", True

    key = jax.random.PRNGKey(0)
    kx, kp = jax.random.split(key)
    x = jax.random.normal(kx, (N, 2 * Cin, H, W), jnp.float32)
    params = init_params(kp, Cin, Cout, K, mask_type)

    out = stacked_pixelcnn_layer(x, params, k=K, residual=residual,
                                 mask_type=mask_type)
    out = jax.block_until_ready(out)

    assert out.shape == (N, 2 * Cout, H, W), out.shape
    ref = ref_forward(x, params, k=K, residual=residual)
    if not bool(jnp.allclose(out, ref, atol=2e-2, rtol=2e-2)):
        raise AssertionError("Pallas kernel output mismatches JAX reference")
    print("KERNEL_OK")
</pallas_src>

<mosaic_0001>
module attributes {stable_mosaic.version = 11 : i64} {
  func.func @_pixelcnn_kernel(%arg0: i32, %arg1: memref<2x24x256xbf16, #tpu.memory_space<vmem>>, %arg2: memref<2x8x256xbf16, #tpu.memory_space<vmem>>, %arg3: memref<4x24xbf16, #tpu.memory_space<vmem>>, %arg4: memref<4x8xbf16, #tpu.memory_space<vmem>>, %arg5: memref<2x4x4xf32, #tpu.memory_space<vmem>>, %arg6: memref<4x4xf32, #tpu.memory_space<vmem>>, %arg7: memref<2x8x256xf32, #tpu.memory_space<vmem>>) attributes {dimension_semantics = [#tpu.dimension_semantics<parallel>], iteration_bounds = array<i64: 1>, scalar_prefetch = 0 : i64, scratch_operands = 0 : i64, tpu.core_type = #tpu.core_type<tc>, window_params = [{transform_indices = @transform_0, window_bounds = array<i64: 2, 24, 256>}, {transform_indices = @transform_1, window_bounds = array<i64: 2, 8, 256>}, {pipeline_mode = #tpu.pipeline_mode<synchronous>, transform_indices = @transform_2, window_bounds = array<i64: 4, 24>}, {pipeline_mode = #tpu.pipeline_mode<synchronous>, transform_indices = @transform_3, window_bounds = array<i64: 4, 8>}, {pipeline_mode = #tpu.pipeline_mode<synchronous>, transform_indices = @transform_4, window_bounds = array<i64: 2, 4, 4>}, {pipeline_mode = #tpu.pipeline_mode<synchronous>, transform_indices = @transform_5, window_bounds = array<i64: 4, 4>}, {transform_indices = @transform_6, window_bounds = array<i64: 2, 8, 256>}]} {
    %c0 = arith.constant 0 : index
    %c0_0 = arith.constant 0 : index
    %0 = vector.load %arg3[%c0, %c0_0] : memref<4x24xbf16, #tpu.memory_space<vmem>>, vector<4x24xbf16>
    %c0_1 = arith.constant 0 : index
    %c0_2 = arith.constant 0 : index
    %1 = vector.load %arg4[%c0_1, %c0_2] : memref<4x8xbf16, #tpu.memory_space<vmem>>, vector<4x8xbf16>
    %c0_3 = arith.constant 0 : index
    %c0_4 = arith.constant 0 : index
    %c0_5 = arith.constant 0 : index
    %2 = vector.load %arg5[%c0_3, %c0_4, %c0_5] : memref<2x4x4xf32, #tpu.memory_space<vmem>>, vector<1x4x4xf32>
    %3 = vector.shape_cast %2 : vector<1x4x4xf32> to vector<4x4xf32>
    %c1 = arith.constant 1 : index
    %c0_6 = arith.constant 0 : index
    %c0_7 = arith.constant 0 : index
    %4 = vector.load %arg5[%c1, %c0_6, %c0_7] : memref<2x4x4xf32, #tpu.memory_space<vmem>>, vector<1x4x4xf32>
    %5 = vector.shape_cast %4 : vector<1x4x4xf32> to vector<4x4xf32>
    %c0_8 = arith.constant 0 : index
    %c0_9 = arith.constant 0 : index
    %6 = vector.load %arg6[%c0_8, %c0_9] : memref<4x4xf32, #tpu.memory_space<vmem>>, vector<4x1xf32>
    %c0_10 = arith.constant 0 : index
    %c1_11 = arith.constant 1 : index
    %7 = vector.load %arg6[%c0_10, %c1_11] : memref<4x4xf32, #tpu.memory_space<vmem>>, vector<4x1xf32>
    %c0_12 = arith.constant 0 : index
    %c2 = arith.constant 2 : index
    %8 = vector.load %arg6[%c0_12, %c2] : memref<4x4xf32, #tpu.memory_space<vmem>>, vector<4x1xf32>
    %c0_13 = arith.constant 0 : index
    %c3 = arith.constant 3 : index
    %9 = vector.load %arg6[%c0_13, %c3] : memref<4x4xf32, #tpu.memory_space<vmem>>, vector<4x1xf32>
    %c0_14 = arith.constant 0 : index
    %c0_15 = arith.constant 0 : index
    %c0_16 = arith.constant 0 : index
    %10 = vector.load %arg1[%c0_14, %c0_15, %c0_16] : memref<2x24x256xbf16, #tpu.memory_space<vmem>>, vector<1x24x256xbf16>
    %11 = vector.shape_cast %10 : vector<1x24x256xbf16> to vector<24x256xbf16>
    %c0_17 = arith.constant 0 : index
    %c0_18 = arith.constant 0 : index
    %c0_19 = arith.constant 0 : index
    %12 = vector.load %arg2[%c0_17, %c0_18, %c0_19] : memref<2x8x256xbf16, #tpu.memory_space<vmem>>, vector<1x8x256xbf16>
    %13 = vector.shape_cast %12 : vector<1x8x256xbf16> to vector<8x256xbf16>
    %cst = arith.constant dense<0.000000e+00> : vector<4x256xf32>
    %14 = tpu.matmul %0, %11, %cst {dimension_numbers = #tpu.dot_dimension_numbers<[1], [0], [0], [1], [0, 0, 1, 1], [], []>} : vector<4x24xbf16>, vector<24x256xbf16>, vector<4x256xf32> -> vector<4x256xf32>
    %15 = vector.broadcast %6 : vector<4x1xf32> to vector<4x256xf32>
    %16 = arith.addf %14, %15 : vector<4x256xf32>
    %cst_20 = arith.constant dense<0.000000e+00> : vector<4x256xf32>
    %17 = tpu.matmul %1, %13, %cst_20 {dimension_numbers = #tpu.dot_dimension_numbers<[1], [0], [0], [1], [0, 0, 1, 1], [], []>} : vector<4x8xbf16>, vector<8x256xbf16>, vector<4x256xf32> -> vector<4x256xf32>
    %18 = vector.broadcast %7 : vector<4x1xf32> to vector<4x256xf32>
    %19 = arith.addf %17, %18 : vector<4x256xf32>
    %cst_21 = arith.constant 0.000000e+00 : f32
    %20 = vector.broadcast %cst_21 : f32 to vector<4x16xf32>
    %21 = vector.extract_strided_slice %16 {offsets = [0, 0], sizes = [4, 240], strides = [1, 1]} : vector<4x256xf32> to vector<4x240xf32>
    %22 = tpu.concatenate %20, %21 in 1 : vector<4x16xf32>, vector<4x240xf32> -> vector<4x256xf32>
    %cst_22 = arith.constant dense<0.000000e+00> : vector<4x256xf32>
    %23 = tpu.matmul %3, %22, %cst_22 {dimension_numbers = #tpu.dot_dimension_numbers<[1], [0], [0], [1], [0, 0, 1, 1], [], []>} : vector<4x4xf32>, vector<4x256xf32>, vector<4x256xf32> -> vector<4x256xf32>
    %24 = arith.addf %19, %23 : vector<4x256xf32>
    %25 = vector.broadcast %8 : vector<4x1xf32> to vector<4x256xf32>
    %26 = arith.addf %24, %25 : vector<4x256xf32>
    %cst_23 = arith.constant 0.000000e+00 : f32
    %27 = vector.broadcast %cst_23 : f32 to vector<4x256xf32>
    %28 = arith.maximumf %16, %27 : vector<4x256xf32>
    %cst_24 = arith.constant 0.000000e+00 : f32
    %29 = vector.broadcast %cst_24 : f32 to vector<4x256xf32>
    %30 = arith.maximumf %26, %29 : vector<4x256xf32>
    %cst_25 = arith.constant dense<0.000000e+00> : vector<4x256xf32>
    %31 = tpu.matmul %5, %30, %cst_25 {dimension_numbers = #tpu.dot_dimension_numbers<[1], [0], [0], [1], [0, 0, 1, 1], [], []>} : vector<4x4xf32>, vector<4x256xf32>, vector<4x256xf32> -> vector<4x256xf32>
    %32 = vector.broadcast %9 : vector<4x1xf32> to vector<4x256xf32>
    %33 = arith.addf %31, %32 : vector<4x256xf32>
    %34 = vector.extract_strided_slice %13 {offsets = [0, 0], sizes = [4, 256], strides = [1, 1]} : vector<8x256xbf16> to vector<4x256xbf16>
    %35 = arith.extf %34 : vector<4x256xbf16> to vector<4x256xf32>
    %36 = arith.addf %33, %35 : vector<4x256xf32>
    %37 = tpu.concatenate %28, %36 in 0 : vector<4x256xf32>, vector<4x256xf32> -> vector<8x256xf32>
    %c0_26 = arith.constant 0 : index
    %c0_27 = arith.constant 0 : index
    %c0_28 = arith.constant 0 : index
    %38 = vector.load %arg7[%c0_26, %c0_27, %c0_28] : memref<2x8x256xf32, #tpu.memory_space<vmem>>, vector<1x8x256xf32>
    %39 = vector.shape_cast %38 : vector<1x8x256xf32> to vector<8x256xf32>
    %40 = vector.shape_cast %37 : vector<8x256xf32> to vector<1x8x256xf32>
    tpu.vector_store %arg7[%c0_26, %c0_27, %c0_28], %40 {strides = array<i32>} : memref<2x8x256xf32, #tpu.memory_space<vmem>>, vector<1x8x256xf32>,
    %c1_29 = arith.constant 1 : index
    %c0_30 = arith.constant 0 : index
    %c0_31 = arith.constant 0 : index
    %41 = vector.load %arg1[%c1_29, %c0_30, %c0_31] : memref<2x24x256xbf16, #tpu.memory_space<vmem>>, vector<1x24x256xbf16>
    %42 = vector.shape_cast %41 : vector<1x24x256xbf16> to vector<24x256xbf16>
    %c1_32 = arith.constant 1 : index
    %c0_33 = arith.constant 0 : index
    %c0_34 = arith.constant 0 : index
    %43 = vector.load %arg2[%c1_32, %c0_33, %c0_34] : memref<2x8x256xbf16, #tpu.memory_space<vmem>>, vector<1x8x256xbf16>
    %44 = vector.shape_cast %43 : vector<1x8x256xbf16> to vector<8x256xbf16>
    %cst_35 = arith.constant dense<0.000000e+00> : vector<4x256xf32>
    %45 = tpu.matmul %0, %42, %cst_35 {dimension_numbers = #tpu.dot_dimension_numbers<[1], [0], [0], [1], [0, 0, 1, 1], [], []>} : vector<4x24xbf16>, vector<24x256xbf16>, vector<4x256xf32> -> vector<4x256xf32>
    %46 = vector.broadcast %6 : vector<4x1xf32> to vector<4x256xf32>
    %47 = arith.addf %45, %46 : vector<4x256xf32>
    %cst_36 = arith.constant dense<0.000000e+00> : vector<4x256xf32>
    %48 = tpu.matmul %1, %44, %cst_36 {dimension_numbers = #tpu.dot_dimension_numbers<[1], [0], [0], [1], [0, 0, 1, 1], [], []>} : vector<4x8xbf16>, vector<8x256xbf16>, vector<4x256xf32> -> vector<4x256xf32>
    %49 = vector.broadcast %7 : vector<4x1xf32> to vector<4x256xf32>
    %50 = arith.addf %48, %49 : vector<4x256xf32>
    %cst_37 = arith.constant 0.000000e+00 : f32
    %51 = vector.broadcast %cst_37 : f32 to vector<4x16xf32>
    %52 = vector.extract_strided_slice %47 {offsets = [0, 0], sizes = [4, 240], strides = [1, 1]} : vector<4x256xf32> to vector<4x240xf32>
    %53 = tpu.concatenate %51, %52 in 1 : vector<4x16xf32>, vector<4x240xf32> -> vector<4x256xf32>
    %cst_38 = arith.constant dense<0.000000e+00> : vector<4x256xf32>
    %54 = tpu.matmul %3, %53, %cst_38 {dimension_numbers = #tpu.dot_dimension_numbers<[1], [0], [0], [1], [0, 0, 1, 1], [], []>} : vector<4x4xf32>, vector<4x256xf32>, vector<4x256xf32> -> vector<4x256xf32>
    %55 = arith.addf %50, %54 : vector<4x256xf32>
    %56 = vector.broadcast %8 : vector<4x1xf32> to vector<4x256xf32>
    %57 = arith.addf %55, %56 : vector<4x256xf32>
    %cst_39 = arith.constant 0.000000e+00 : f32
    %58 = vector.broadcast %cst_39 : f32 to vector<4x256xf32>
    %59 = arith.maximumf %47, %58 : vector<4x256xf32>
    %cst_40 = arith.constant 0.000000e+00 : f32
    %60 = vector.broadcast %cst_40 : f32 to vector<4x256xf32>
    %61 = arith.maximumf %57, %60 : vector<4x256xf32>
    %cst_41 = arith.constant dense<0.000000e+00> : vector<4x256xf32>
    %62 = tpu.matmul %5, %61, %cst_41 {dimension_numbers = #tpu.dot_dimension_numbers<[1], [0], [0], [1], [0, 0, 1, 1], [], []>} : vector<4x4xf32>, vector<4x256xf32>, vector<4x256xf32> -> vector<4x256xf32>
    %63 = vector.broadcast %9 : vector<4x1xf32> to vector<4x256xf32>
    %64 = arith.addf %62, %63 : vector<4x256xf32>
    %65 = vector.extract_strided_slice %44 {offsets = [0, 0], sizes = [4, 256], strides = [1, 1]} : vector<8x256xbf16> to vector<4x256xbf16>
    %66 = arith.extf %65 : vector<4x256xbf16> to vector<4x256xf32>
    %67 = arith.addf %64, %66 : vector<4x256xf32>
    %68 = tpu.concatenate %59, %67 in 0 : vector<4x256xf32>, vector<4x256xf32> -> vector<8x256xf32>
    %c1_42 = arith.constant 1 : index
    %c0_43 = arith.constant 0 : index
    %c0_44 = arith.constant 0 : index
    %69 = vector.load %arg7[%c1_42, %c0_43, %c0_44] : memref<2x8x256xf32, #tpu.memory_space<vmem>>, vector<1x8x256xf32>
    %70 = vector.shape_cast %69 : vector<1x8x256xf32> to vector<8x256xf32>
    %71 = vector.shape_cast %68 : vector<8x256xf32> to vector<1x8x256xf32>
    tpu.vector_store %arg7[%c1_42, %c0_43, %c0_44], %71 {strides = array<i32>} : memref<2x8x256xf32, #tpu.memory_space<vmem>>, vector<1x8x256xf32>,
    return
  }
  func.func @transform_0(%arg0: i32) -> (i32, i32, i32) {
    %c0_i32 = arith.constant 0 : i32
    %c0_i32_0 = arith.constant 0 : i32
    %c0_i32_1 = arith.constant 0 : i32
    return %arg0, %c0_i32, %c0_i32_0 : i32, i32, i32
  }
  func.func @transform_1(%arg0: i32) -> (i32, i32, i32) {
    %c0_i32 = arith.constant 0 : i32
    %c0_i32_0 = arith.constant 0 : i32
    %c0_i32_1 = arith.constant 0 : i32
    return %arg0, %c0_i32, %c0_i32_0 : i32, i32, i32
  }
  func.func @transform_2(%arg0: i32) -> (i32, i32) {
    %c0_i32 = arith.constant 0 : i32
    %c0_i32_0 = arith.constant 0 : i32
    %c0_i32_1 = arith.constant 0 : i32
    return %c0_i32, %c0_i32_0 : i32, i32
  }
  func.func @transform_3(%arg0: i32) -> (i32, i32) {
    %c0_i32 = arith.constant 0 : i32
    %c0_i32_0 = arith.constant 0 : i32
    %c0_i32_1 = arith.constant 0 : i32
    return %c0_i32, %c0_i32_0 : i32, i32
  }
  func.func @transform_4(%arg0: i32) -> (i32, i32, i32) {
    %c0_i32 = arith.constant 0 : i32
    %c0_i32_0 = arith.constant 0 : i32
    %c0_i32_1 = arith.constant 0 : i32
    %c0_i32_2 = arith.constant 0 : i32
    return %c0_i32, %c0_i32_0, %c0_i32_1 : i32, i32, i32
  }
  func.func @transform_5(%arg0: i32) -> (i32, i32) {
    %c0_i32 = arith.constant 0 : i32
    %c0_i32_0 = arith.constant 0 : i32
    %c0_i32_1 = arith.constant 0 : i32
    return %c0_i32, %c0_i32_0 : i32, i32
  }
  func.func @transform_6(%arg0: i32) -> (i32, i32, i32) {
    %c0_i32 = arith.constant 0 : i32
    %c0_i32_0 = arith.constant 0 : i32
    %c0_i32_1 = arith.constant 0 : i32
    return %arg0, %c0_i32, %c0_i32_0 : i32, i32, i32
  }
}

</mosaic_0001>

<bundles_post_ra>
// kernel: tpu_custom_call.1
= control target key start
LH: loop header
LB: loop body
LE: loop exit
PB: predicated region body
PF: predicated region fallthrough
CT: control target
= control target key end

     0   :  { %11 = vsyncpa [#allocation3], 0  ;;  %s983_s0 = inlined_call_operand.hbm [shape: bf16[2,24,256], index: 0, kind: input, shape index: {}]   ;;  %s984_s1 = inlined_call_operand.hbm [shape: bf16[2,8,256], index: 1, kind: input, shape index: {}]   ;;  %s985_s2 = inlined_call_operand.hbm [shape: bf16[4,24], index: 2, kind: input, shape index: {}]   ;;  %s986_s3 = inlined_call_operand.hbm [shape: bf16[4,8], index: 3, kind: input, shape index: {}]   ;;  %s987_s4 = inlined_call_operand.hbm [shape: f32[2,4,4], index: 4, kind: input, shape index: {}]   ;;  %s988_s5 = inlined_call_operand.vmem [shape: f32[4,4], index: 5, kind: input, shape index: {}]   ;;  %s989_s6 = inlined_call_operand.hbm [shape: f32[2,8,256], index: 6, kind: output, shape index: {}]  }
   0x1   :  { %12 = vsyncpa [#allocation6], 0 }
   0x2   :  { %13 = vsyncpa [#allocation9], 0 }
   0x3   :  { %14 = vsyncpa [#allocation4], 0  ;;  %s32_s23 = sshll.u32 %s984_s1, 4  ;;  %s800_s24 = smov [#allocation5]   ;;  %s33_s23 = int_to_ptr.hbm [resolvable:$true] %s32_s23 }
   0x4   :  { %s34_s25 = sshll.u32 %s800_s24, 4  ;;  %s57_s28 = sshll.u32 %s986_s3, 4  ;;  %s35_s25 = int_to_ptr.vmem [resolvable:$true] %s34_s25  ;;  %s58_s28 = int_to_ptr.hbm [resolvable:$true] %s57_s28 }
   0x5   :  { %s801_s29 = smov 128   ;;  %s802_s30 = smov 8  }
   0x6   :  { %40 = dma.hbm_to_vmem [thread:$0]  %s33_s23, 256, %s35_s25, [#allocation6], %s801_s29, %s801_s29, %s802_s30  }
   0x7   :  { %s803_s7 = smov [#allocation8]   ;;  %s19_s11 = sshll.u32 %s983_s0, 4  ;;  %s20_s11 = int_to_ptr.hbm [resolvable:$true] %s19_s11 }
   0x8   :  { %s59_s8 = sshll.u32 %s803_s7, 4  ;;  %s46_s13 = sshll.u32 %s985_s2, 4  ;;  %s60_s8 = int_to_ptr.vmem [resolvable:$true] %s59_s8  ;;  %s47_s13 = int_to_ptr.hbm [resolvable:$true] %s46_s13 }
   0x9   :  { %62 = dma.hbm_to_vmem [thread:$0]  %s58_s28, 32, %s60_s8, [#allocation9]  }
   0xa   :  { %s804_s14 = smov [#allocation2]   ;;  %s805_s3 = smov [#allocation7]  }
   0xb   :  { %s21_s15 = sshll.u32 %s804_s14, 4  ;;  %s48_s16 = sshll.u32 %s805_s3, 4  ;;  %s22_s15 = int_to_ptr.vmem [resolvable:$true] %s21_s15  ;;  %s49_s16 = int_to_ptr.vmem [resolvable:$true] %s48_s16 }
   0xc   :  { %27 = dma.hbm_to_vmem [thread:$0]  %s20_s11, 768, %s22_s15, [#allocation3], %s801_s29, %s801_s29, %s802_s30  }
   0xd   :  { %s67_s19 = sshll.u32 %s987_s4, 4  ;;  %s806_s0 = smov [#allocation10]   ;;  %s68_s19 = int_to_ptr.hbm [resolvable:$true] %s67_s19 }
   0xe   :  { %51 = dma.hbm_to_vmem [thread:$0]  %s47_s13, 32, %s49_s16, [#allocation6]  }
   0xf   :  { %s69_s20 = sshll.u32 %s806_s0, 4  ;;  %s807_s21 = smov 64   ;;  %s70_s20 = int_to_ptr.vmem [resolvable:$true] %s69_s20 }
  0x10   :  { %s808_s22 = smov 4  }
  0x11   :  { %75 = dma.hbm_to_vmem [thread:$0]  %s68_s19, 128, %s70_s20, [#allocation9], %s807_s21, %s807_s21, %s808_s22  }
  0x12   :  { %792 = dma.done.wait [#allocation3], 768  }
  0x13   :  { %793 = vsyncadd [#allocation3], 4294966528 }
  0x14   :  { %794 = dma.done.wait [#allocation6], 288  }
  0x15   :  { %795 = vsyncadd [#allocation6], 4294967008 }
  0x16   :  { %796 = dma.done.wait [#allocation9], 160  }
  0x17   :  { %797 = vsyncadd [#allocation9], 4294967136  ;;  %v809_v0 = vmov 0   ;;  %v107_v1 = vld [vmem:[#allocation2 + $0x10] sm:$0xff]  ;;  %vm133_vm0 = vcmask 1043456   ;;  %vm129_vm1 = vcmask 195584  }
  0x18   :  { %643 = vset.pattern.permute.xlu0 %v809_v0  ;;  %v121_v2 = vunpack.c.l.b16 %v107_v1  ;;  %v122_v3 = vunpack.c.h.b16 %v107_v1  ;;  %v585_v4 = vld [vmem:[#allocation2] sm:$0xf]  ;;  %v624_v8 = vld [vmem:[#allocation2 + $0x4] sm:$0xf0]  ;;  %v623_v9 = vld [vmem:[#allocation2 + $0x4] sm:$0xf] }
  0x19   :  { %v869_v5 = vld [vmem:[%s988_s5] sm:$0xf]  ;;  %v587_v10 = vld [vmem:[#allocation2 + $0x8] sm:$0xf0]  ;;  %v586_v13 = vor.u32 %v624_v8, %v585_v4  ;;  %v880_v16 = vld [vmem:[#allocation5] sm:$0xff]  ;;  %vm175_vm2 = vcmask 64512  }
  0x1a   :  { %v125_v6 = vpack.c.b16 %v121_v2, %v121_v2  ;;  %v126_v7 = vpack.c.b16 %v122_v3, %v122_v3  ;;  %111 = vperm.xlu0 %643, %v869_v5   ;;  %v590_v14 = vor.u32 %v623_v9, %v587_v10  ;;  %v874_v15 = vld [vmem:[#allocation7] sm:$0x3]  ;;  %v172_v17 = vunpack.c.h.b16 %v880_v16  ;;  %v886_v23 = vld [vmem:[#allocation8] sm:$0x3]  ;;  %s810_s5 = smov 16   ;;  %v352_v33 = vld [vmem:[#allocation2 + $0x28] sm:$0xff] }
  0x1b   :  { %v171_v18 = vunpack.c.l.b16 %v880_v16  ;;  %v811_v31 = vmov 1   ;;  %v812_v32 = vmov 2   ;;  %v362_v34 = vunpack.c.l.b16 %v352_v33  ;;  %v906_v38 = vld [vmem:[#allocation10] sm:$0xf]  ;;  %v605_v44 = vld [vmem:[#allocation2 + $0x18] sm:$0xf] }
  0x1c   :  { %v135_v11 = vsel %vm133_vm0, %v125_v6, 0  ;;  %v138_v12 = vsel %vm133_vm0, %v126_v7, 0  ;;  %v174_v19 = vpack.c.b16 %v172_v17, %v172_v17  ;;  %644 = vset.pattern.permute.xlu1 %v811_v31  ;;  %645 = vset.pattern.permute.xlu2 %v812_v32  ;;  %v363_v35 = vunpack.c.h.b16 %v352_v33  ;;  %v626_v45 = vld [vmem:[#allocation2 + $0x1c] sm:$0xf0]  ;;  %v625_v49 = vld [vmem:[#allocation2 + $0x1c] sm:$0xf] }
  0x1d   :  { %146 = vmatpush.bf16.msra.mxu0 %v135_v11  ;;  %159 = vmatpush.bf16.msra.mxu1 %v138_v12  ;;  %v173_v20 = vpack.c.b16 %v171_v18, %v171_v18  ;;  %v366_v36 = vpack.c.b16 %v362_v34, %v362_v34  ;;  %vm217_vm3 = vcmask 130048   ;;  %vm221_vm4 = vcmask 31744   ;;  %v607_v50 = vld [vmem:[#allocation2 + $0x20] sm:$0xf0]  ;;  %v923_v56 = vld [vmem:[#allocation5 + $0x8] sm:$0xff]  ;;  %s814_s23 = smov [#allocation11]  }
  0x1e   :  { %v183_v21 = vsel %vm133_vm0, %v174_v19, 0  ;;  %273 = vperm.xlu2 %645, %v869_v5   ;;  %v367_v37 = vpack.c.b16 %v363_v35, %v363_v35  ;;  %v606_v51 = vor.u32 %v626_v45, %v605_v44  ;;  %v610_v52 = vor.u32 %v625_v49, %v607_v50  ;;  %v103_v9 = vld [vmem:[#allocation10 + $0x4] sm:$0xf]  ;;  %s566_s24 = sshll.u32 %s814_s23, 4  ;;  %s568_s27 = sshll.u32 %s989_s6, 4  ;;  %s567_s24 = int_to_ptr.vmem [resolvable:$true] %s566_s24  ;;  %s569_s27 = int_to_ptr.hbm [resolvable:$true] %s568_s27 }
  0x1f   :  { %v180_v22 = vsel %vm133_vm0, %v173_v20, 0  ;;  %205 = vmatpush.bf16.msra.mxu3 %v183_v21  ;;  %v371_v43 = vsel %vm133_vm0, %v366_v36, 0  ;;  %v813_v55 = vmov 3   ;;  %v403_v59 = vunpack.c.l.b16 %v923_v56  ;;  %s815_s28 = smov 256  }
  0x20   :  { %192 = vmatpush.bf16.msra.mxu2 %v180_v22  ;;  %v374_v48 = vsel %vm133_vm0, %v367_v37, 0  ;;  %v404_v60 = vunpack.c.h.b16 %v923_v56 }
  0x21   :  { %147 = vmatpush.bf16.msra.mxu0 %v586_v13  ;;  %160 = vmatpush.bf16.msra.mxu1 %v590_v14  ;;  %v405_v3 = vpack.c.b16 %v403_v59, %v403_v59 }
  0x22   :  { %594 = vmatmul.msk.bf16.vlgmr.msra.gmra.mxu3 %vm175_vm2, %v886_v23  ;;  %647 = vset.pattern.permute.xlu0 %v813_v55  ;;  %v406_v4 = vpack.c.b16 %v404_v60, %v404_v60 }
  0x23   :  { %593 = vmatmul.msk.bf16.vlgmr.msra.gmra.mxu2 %vm175_vm2, %v886_v23  ;;  %v408_v10 = vsel %vm133_vm0, %v405_v3, 0 }
  0x24   :  { %591 = vmatmul.msk.bf16.vlgmr.msra.gmra.mxu0 %vm129_vm1, %v874_v15  ;;  %592 = vmatmul.msk.bf16.vlgmr.msra.gmra.mxu1 %vm129_vm1, %v874_v15  ;;  %v411_v11 = vsel %vm133_vm0, %v406_v4, 0 }
  0x78   :  { %v931_v62 = vpop.permute.xlu2 %273 }
  0x8c   :  { %v892_v24 = vpop.permute.xlu0 %111 }
  0xa1   :  { %v149_v25 = vpop.f32.mrf.mxu0  ;;  %v162_v26 = vpop.f32.mrf.mxu1 }
  0xa2   :  { %v895_v27 = vadd.f32 %v149_v25, %v892_v24  ;;  %v898_v28 = vadd.f32 %v162_v26, %v892_v24  ;;  %v336_v25 = vunpack.c.h.bf16 %v880_v16 }
  0xa4   :  { %215 = vrot.lane.b32.xlu1 %v898_v28, %s810_s5  ;;  %213 = vrot.lane.b32.xlu0 %v895_v27, %s810_s5  ;;  %v278_v34 = vmax.f32 %v895_v27, 0.0  ;;  %v279_v35 = vmax.f32 %v898_v28, 0.0 }
  0xa5   :  { %v207_v39 = vpop.f32.mrf.mxu3 }
  0xa6   :  { %v194_v40 = vpop.f32.mrf.mxu2 }
  0xa9   :  { %v151_v29 = vpop.f32.mrf.mxu0  ;;  %v164_v30 = vpop.f32.mrf.mxu1 }
  0xac   :  { %167 = vperm.xlu1 %644, %v869_v5  }
  0xad   :  { %v209_v53 = vpop.f32.mrf.mxu3 }
  0xae   :  { %v196_v54 = vpop.f32.mrf.mxu2 }
  0xb4   :  { %646 = vset.pattern.permute.xlu1 %v813_v55 }
  0xb5   :  { %283 = vperm.xlu1 %646, %v869_v5  }
 0x116   :  { %v216_v41 = vpop.permute.xlu1 %215  ;;  %v214_v42 = vpop.permute.xlu0 %213 }
 0x117   :  { %v220_v46 = vsel %vm217_vm3, 0.0, %v214_v42  ;;  %v218_v47 = vsel %vm217_vm3, %v214_v42, %v216_v41 }
 0x118   :  { %595 = vmatpush.msk.msrb.mxu2 %vm133_vm0, %v220_v46  ;;  %597 = vmatpush.msk.msrb.mxu3 %vm133_vm0, %v218_v47 }
 0x119   :  { %596 = vmatmul.msk.f32.vlgmr.msrb.gmra.mxu2 %vm221_vm4, %v906_v38  ;;  %598 = vmatmul.msk.f32.vlgmr.msrb.gmra.mxu3 %vm221_vm4, %v906_v38 }
 0x11a   :  { %382 = vmatpush.bf16.msra.mxu2 %v371_v43  ;;  %395 = vmatpush.bf16.msra.mxu3 %v374_v48 }
 0x11e   :  { %383 = vmatpush.bf16.msra.mxu2 %v606_v51  ;;  %396 = vmatpush.bf16.msra.mxu3 %v610_v52  ;;  %v925_v57 = vpop.permute.xlu1 %167  ;;  %v547_v51 = vunpack.c.l.bf16 %v923_v56 }
 0x11f   :  { %v195_v58 = vadd.f32 %v194_v40, %v925_v57  ;;  %v208_v61 = vadd.f32 %v207_v39, %v925_v57 }
 0x121   :  { %611 = vmatmul.msk.bf16.vlgmr.msra.gmra.mxu2 %vm129_vm1, %v874_v15  ;;  %612 = vmatmul.msk.bf16.vlgmr.msra.gmra.mxu3 %vm129_vm1, %v874_v15 }
 0x19c   :  { %v247_v63 = vpop.f32.mrf.mxu2  ;;  %v267_v0 = vpop.f32.mrf.mxu3 }
 0x19d   :  { %v270_v1 = vadd.f32 %v247_v63, %v195_v58  ;;  %v271_v2 = vadd.f32 %v267_v0, %v208_v61 }
 0x19f   :  { %v276_v5 = vadd.f32 %v931_v62, %v270_v1  ;;  %v277_v6 = vadd.f32 %v931_v62, %v271_v2 }
 0x1a1   :  { %v280_v7 = vmax.f32 %v276_v5, 0.0  ;;  %v281_v8 = vmax.f32 %v277_v6, 0.0 }
 0x1a3   :  { %599 = vmatpush.msk.msrb.mxu0 %vm133_vm0, %v280_v7  ;;  %601 = vmatpush.msk.msrb.mxu1 %vm133_vm0, %v281_v8 }
 0x1a4   :  { %600 = vmatmul.msk.f32.vlgmr.msrb.gmra.mxu0 %vm221_vm4, %v103_v9  ;;  %602 = vmatmul.msk.f32.vlgmr.msrb.gmra.mxu1 %vm221_vm4, %v103_v9  ;;  %v385_v12 = vpop.f32.mrf.mxu2  ;;  %v398_v13 = vpop.f32.mrf.mxu3 }
 0x1a5   :  { %v386_v14 = vadd.f32 %v385_v12, %v892_v24  ;;  %v943_v15 = vadd.f32 %v398_v13, %v892_v24  ;;  %420 = vmatpush.bf16.msra.mxu0 %v408_v10  ;;  %433 = vmatpush.bf16.msra.mxu1 %v411_v11  ;;  %v284_v24 = vpop.permute.xlu1 %283 }
 0x1a7   :  { %441 = vrot.lane.b32.xlu2 %v386_v14, %s810_s5  ;;  %443 = vrot.lane.b32.xlu0 %v943_v15, %s810_s5  ;;  %v497_v55 = vmax.f32 %v386_v14, 0.0  ;;  %v498_v63 = vmax.f32 %v943_v15, 0.0 }
 0x1ac   :  { %v400_v17 = vpop.f32.mrf.mxu3  ;;  %613 = vmatmul.msk.bf16.vlgmr.msra.gmra.mxu0 %vm175_vm2, %v886_v23  ;;  %614 = vmatmul.msk.bf16.vlgmr.msra.gmra.mxu1 %vm175_vm2, %v886_v23  ;;  %v387_v18 = vpop.f32.mrf.mxu2  ;;  %v335_v23 = vunpack.c.l.bf16 %v880_v16 }
 0x201   :  { %v442_v19 = vpop.permute.xlu2 %441 }
 0x202   :  { %v447_v20 = vsel %vm217_vm3, 0.0, %v442_v19 }
 0x203   :  { %615 = vmatpush.msk.msrb.mxu2 %vm133_vm0, %v447_v20 }
 0x204   :  { %616 = vmatmul.msk.f32.vlgmr.msrb.gmra.mxu2 %vm221_vm4, %v906_v38 }
 0x219   :  { %v444_v21 = vpop.permute.xlu0 %443 }
 0x21a   :  { %v445_v22 = vsel %vm217_vm3, %v442_v19, %v444_v21 }
 0x21b   :  { %617 = vmatpush.msk.msrb.mxu3 %vm133_vm0, %v445_v22 }
 0x21c   :  { %618 = vmatmul.msk.f32.vlgmr.msrb.gmra.mxu3 %vm221_vm4, %v906_v38 }
 0x221   :  { %v312_v26 = vpop.f32.mrf.mxu0  ;;  %v332_v29 = vpop.f32.mrf.mxu1 }
 0x222   :  { %v313_v30 = vadd.f32 %v312_v26, %v284_v24  ;;  %v333_v31 = vadd.f32 %v332_v29, %v284_v24 }
 0x224   :  { %v337_v32 = vadd.f32 %v335_v23, %v313_v30  ;;  %v338_v33 = vadd.f32 %v336_v25, %v333_v31 }
 0x226   :  { %v341_v36 = vrot.slane %v337_v32, 4  ;;  %v342_v37 = vrot.slane %v338_v33, 4 }
 0x228   :  { %v345_v39 = vsel %vm133_vm0, %v278_v34, %v341_v36  ;;  %v346_v38 = vsel %vm133_vm0, %v279_v35, %v342_v37 }
 0x229   :  { %347 = vst [vmem:[#allocation11] sm:$0xff] %v345_v39  ;;  %v422_v40 = vpop.f32.mrf.mxu0  ;;  %v435_v41 = vpop.f32.mrf.mxu1 }
 0x22a   :  { %348 = vst [vmem:[#allocation11 + $0x8] sm:$0xff] %v346_v38  ;;  %v423_v43 = vadd.f32 %v422_v40, %v925_v57  ;;  %v436_v28 = vadd.f32 %v435_v41, %v925_v57  ;;  %v548_v57 = vunpack.c.h.bf16 %v923_v56 }
 0x231   :  { %v424_v16 = vpop.f32.mrf.mxu0  ;;  %v437_v42 = vpop.f32.mrf.mxu1 }
 0x287   :  { %v470_v44 = vpop.f32.mrf.mxu2 }
 0x288   :  { %v493_v45 = vadd.f32 %v470_v44, %v423_v43 }
 0x28a   :  { %v495_v27 = vadd.f32 %v493_v45, %v931_v62 }
 0x28c   :  { %v499_v46 = vmax.f32 %v495_v27, 0.0 }
 0x28e   :  { %619 = vmatpush.msk.msrb.mxu0 %vm133_vm0, %v499_v46 }
 0x28f   :  { %620 = vmatmul.msk.f32.vlgmr.msrb.gmra.mxu0 %vm221_vm4, %v103_v9 }
 0x29f   :  { %v490_v47 = vpop.f32.mrf.mxu3 }
 0x2a0   :  { %v494_v48 = vadd.f32 %v490_v47, %v436_v28 }
 0x2a2   :  { %v496_v49 = vadd.f32 %v494_v48, %v931_v62 }
 0x2a4   :  { %v500_v50 = vmax.f32 %v496_v49, 0.0 }
 0x2a6   :  { %621 = vmatpush.msk.msrb.mxu1 %vm133_vm0, %v500_v50 }
 0x2a7   :  { %622 = vmatmul.msk.f32.vlgmr.msrb.gmra.mxu1 %vm221_vm4, %v103_v9 }
 0x30c   :  { %v524_v52 = vpop.f32.mrf.mxu0 }
 0x30d   :  { %v525_v53 = vadd.f32 %v524_v52, %v284_v24 }
 0x30f   :  { %v549_v54 = vadd.f32 %v547_v51, %v525_v53 }
 0x311   :  { %v553_v58 = vrot.slane %v549_v54, 4 }
 0x313   :  { %v557_v59 = vsel %vm133_vm0, %v497_v55, %v553_v58 }
 0x314   :  { %560 = vst [vmem:[#allocation11 + $0x10] sm:$0xff] %v557_v59 }
 0x324   :  { %v544_v60 = vpop.f32.mrf.mxu1 }
 0x325   :  { %v545_v61 = vadd.f32 %v544_v60, %v284_v24 }
 0x327   :  { %v550_v62 = vadd.f32 %v548_v57, %v545_v61 }
 0x329   :  { %v554_v0 = vrot.slane %v550_v62, 4 }
 0x32b   :  { %v558_v1 = vsel %vm133_vm0, %v498_v63, %v554_v0 }
 0x32c   :  { %561 = vst [vmem:[#allocation11 + $0x18] sm:$0xff] %v558_v1 }
 0x32d   :  { %574 = dma.vmem_to_hbm [thread:$0]  %s567_s24, 512, %s569_s27, [#allocation4], %s815_s28, %s815_s28, %s810_s5  }
 0x32e   :  { %798 = dma.done.wait [#allocation4], 512  }
 0x32f   :  { %799 = vsyncadd [#allocation4], 4294966784 }
 0x330   :  { %579 = vsyncpa [#allocation3], 1 }
 0x331   :  { %580 = vsyncpa [#allocation6], 1 }
 0x332   :  { %581 = vsyncpa [#allocation9], 1 }
 0x333   :  { %582 = vsyncpa [#allocation4], 1 }

</bundles_post_ra>
